<compile_context>
chip_gen: v7x
topology: tpu7x:2x2x1
jax: 0.10.0
libtpu: 0.0.40
codegen_flags: <defaults>
</compile_context>

<pallas_src>
from functools import partial

import jax
import jax.numpy as jnp
from jax.experimental import pallas as pl
from jax.experimental.pallas import tpu as pltpu


def _round_up(x, m):
    return ((x + m - 1) // m) * m


# ----------------------------------------------------------------------------
# Kernel
# ----------------------------------------------------------------------------
def _wce_kernel(n_valid, logits_ref, labels_ref, weights_ref, out_ref,
                num_acc, den_acc):
    i = pl.program_id(0)

    @pl.when(i == 0)
    def _():
        num_acc[...] = jnp.zeros_like(num_acc)
        den_acc[...] = jnp.zeros_like(den_acc)

    logits = logits_ref[...]          # (TB, C) f32
    labels = labels_ref[...]          # (TB, 1) int32
    w = weights_ref[...]              # (1, C)  f32
    TB, C = logits.shape

    # One-hot mask of the label column per row; reused for the weight gather.
    class_ids = jax.lax.broadcasted_iota(jnp.int32, (TB, C), 1)
    onehot = labels == class_ids                                      # (TB, C)

    # Numerically stable log-sum-exp; never materialize the full log_probs.
    m = jnp.max(logits, axis=1, keepdims=True)                        # (TB, 1)
    shifted = logits - m
    lse = jnp.log(jnp.sum(jnp.exp(shifted), axis=1, keepdims=True))   # (TB, 1)
    label_logit = jnp.sum(jnp.where(onehot, shifted, 0.0), axis=1,
                          keepdims=True)                              # (TB, 1)
    nll = lse - label_logit                                           # (TB, 1)

    # Per-sample class weight  weights[labels[i]]  via the same mask (VPU only).
    w_row = jnp.sum(jnp.where(onehot, w, 0.0), axis=1, keepdims=True)  # (TB, 1)

    # Mask batch-padding rows (B was rounded up to a multiple of TB).
    # NOTE: out-of-range labels get an all-zero one-hot row and therefore
    # contribute 0 to both sums (ignore-like) instead of raising as torch does.
    row_ids = i * TB + jax.lax.broadcasted_iota(jnp.int32, (TB, 1), 0)
    w_row = jnp.where(row_ids < n_valid, w_row, 0.0)

    num_acc[...] += jnp.sum(w_row * nll, axis=0, keepdims=True)
    den_acc[...] += jnp.sum(w_row, axis=0, keepdims=True)

    @pl.when(i == pl.num_programs(0) - 1)
    def _():
        out_ref[...] = num_acc[...] / den_acc[...]


# ----------------------------------------------------------------------------
# Wrappers
# ----------------------------------------------------------------------------
def make_class_balanced_weights(dist, beta):
    """Mirrors ClassBalancedCrossEntropyLoss.__init__ (minus the pickle I/O)."""
    effective_nums = jnp.power(dist.astype(jnp.float32), jnp.float32(beta))
    return (1.0 - beta) / (1.0 - effective_nums)


def class_balanced_cross_entropy(logits, labels, weights, *, block_rows=None):
    """loss = F.cross_entropy(logits, labels, weight=weights)  (weighted mean)."""
    B, C = logits.shape
    logits = logits.astype(jnp.float32)
    weights2d = weights.astype(jnp.float32).reshape(1, C)
    labels2d = labels.astype(jnp.int32).reshape(B, 1)

    # ---- batch tile: multiple of 8 sublanes, ~4 MiB of logits per tile ------
    if block_rows is None:
        tb = max(8, min(1024, ((4 << 20) // max(4 * C, 1)) // 8 * 8))
    else:
        tb = max(8, _round_up(int(block_rows), 8))
    tb = min(tb, _round_up(B, 8))

    # ---- pad batch so it tiles evenly (padded rows masked inside the kernel)
    b_pad = _round_up(B, tb)
    if b_pad != B:
        logits = jnp.pad(logits, ((0, b_pad - B), (0, 0)))
        labels2d = jnp.pad(labels2d, ((0, b_pad - B), (0, 0)))
    grid = (b_pad // tb,)

    # ---- compiler hints ------------------------------------------------------
    c_pad = _round_up(C, 128)
    vmem_needed = 4 * (2 * tb * c_pad + 2 * tb * 128 + 2 * 8 * c_pad) + (1 << 20)
    compiler_params = pltpu.CompilerParams(
        # batch axis carries the scalar accumulator -> reduction axis
        dimension_semantics=("arbitrary",),
        vmem_limit_bytes=int(min(max(32 << 20, vmem_needed), 64 << 20)),
    )
    cost = pl.CostEstimate(
        flops=8 * b_pad * C,
        transcendentals=b_pad * (C + 1),
        bytes_accessed=4 * (b_pad * C + 2 * b_pad + C + 1),
    )

    out = pl.pallas_call(
        partial(_wce_kernel, B),
        out_shape=jax.ShapeDtypeStruct((1, 1), jnp.float32),
        grid=grid,
        in_specs=[
            pl.BlockSpec((tb, C), lambda i: (i, 0)),   # logits tile
            pl.BlockSpec((tb, 1), lambda i: (i, 0)),   # labels tile
            pl.BlockSpec((1, C), lambda i: (0, 0)),    # class weights (resident)
        ],
        out_specs=pl.BlockSpec((1, 1), lambda i: (0, 0)),
        scratch_shapes=[pltpu.VMEM((1, 1), jnp.float32),   # weighted NLL sum
                        pltpu.VMEM((1, 1), jnp.float32)],  # weight sum
        compiler_params=compiler_params,
        cost_estimate=cost,
    )(logits, labels2d, weights2d)
    return out[0, 0]


# ----------------------------------------------------------------------------
# Pure-JAX reference (for sanity check)
# ----------------------------------------------------------------------------
def _reference(logits, labels, weights):
    logp = jax.nn.log_softmax(logits, axis=-1)
    nll = -jnp.take_along_axis(logp, labels[:, None], axis=1)[:, 0]
    w = weights[labels]
    return jnp.sum(w * nll) / jnp.sum(w)


# ----------------------------------------------------------------------------
if __name__ == "__main__":
    num_classes = 128
    batch = 64
    beta = 0.99

    key = jax.random.PRNGKey(0)
    k_dist, k_logits, k_labels = jax.random.split(key, 3)

    # TODO(synk): the real module unpickles `dist_file`; host-side file I/O has
    # no Pallas equivalent, so the class distribution is built in-script.
    dist = jax.random.uniform(k_dist, (num_classes,), jnp.float32, 0.01, 1.0)
    dist = dist / jnp.sum(dist)
    weights = make_class_balanced_weights(dist, beta)

    logits = jax.random.normal(k_logits, (batch, num_classes), jnp.float32)
    labels = jax.random.randint(k_labels, (batch,), 0, num_classes, jnp.int32)

    # Default (single-tile) path.
    loss = class_balanced_cross_entropy(logits, labels, weights)
    loss = jax.block_until_ready(loss)

    # Multi-tile path (exercises the pipelined grid + accumulator finalize).
    loss_tiled = class_balanced_cross_entropy(logits, labels, weights,
                                              block_rows=16)
    loss_tiled = jax.block_until_ready(loss_tiled)

    ref = _reference(logits, labels, weights)
    assert jnp.allclose(loss, ref, rtol=1e-5, atol=1e-5), (loss, ref)
    assert jnp.allclose(loss_tiled, ref, rtol=1e-5, atol=1e-5), (loss_tiled, ref)

    print("KERNEL_OK")
</pallas_src>

<mosaic_0001>
module attributes {stable_mosaic.version = 11 : i64} {
  func.func @_wce_kernel(%arg0: i32, %arg1: memref<64x128xf32, #tpu.memory_space<vmem>>, %arg2: memref<64x1xi32, #tpu.memory_space<vmem>>, %arg3: memref<1x128xf32, #tpu.memory_space<vmem>>, %arg4: memref<1x1xf32, #tpu.memory_space<vmem>>, %arg5: memref<1x1xf32, #tpu.memory_space<vmem>>, %arg6: memref<1x1xf32, #tpu.memory_space<vmem>>) attributes {dimension_semantics = [#tpu.dimension_semantics<arbitrary>], iteration_bounds = array<i64: 1>, scalar_prefetch = 0 : i64, scratch_operands = 2 : i64, tpu.core_type = #tpu.core_type<tc>, window_params = [{transform_indices = @transform_0, window_bounds = array<i64: 64, 128>}, {transform_indices = @transform_1, window_bounds = array<i64: 64, 1>}, {pipeline_mode = #tpu.pipeline_mode<synchronous>, transform_indices = @transform_2, window_bounds = array<i64: 1, 128>}, {pipeline_mode = #tpu.pipeline_mode<synchronous>, transform_indices = @transform_3, window_bounds = array<i64: 1, 1>}]} {
    %c0_i32 = arith.constant 0 : i32
    %0 = arith.cmpi eq, %arg0, %c0_i32 : i32
    %1 = arith.extui %0 : i1 to i32
    %c0_i32_0 = arith.constant 0 : i32
    %2 = arith.cmpi ne, %1, %c0_i32_0 : i32
    scf.if %2 {
      %cst_25 = arith.constant 0.000000e+00 : f32
      %50 = vector.broadcast %cst_25 : f32 to vector<1x1xf32>
      %c0_26 = arith.constant 0 : index
      %c0_27 = arith.constant 0 : index
      %51 = vector.load %arg5[%c0_26, %c0_27] : memref<1x1xf32, #tpu.memory_space<vmem>>, vector<1x1xf32>
      tpu.vector_store %arg5[%c0_26, %c0_27], %50 {strides = array<i32>} : memref<1x1xf32, #tpu.memory_space<vmem>>, vector<1x1xf32>,
      %cst_28 = arith.constant 0.000000e+00 : f32
      %52 = vector.broadcast %cst_28 : f32 to vector<1x1xf32>
      %c0_29 = arith.constant 0 : index
      %c0_30 = arith.constant 0 : index
      %53 = vector.load %arg6[%c0_29, %c0_30] : memref<1x1xf32, #tpu.memory_space<vmem>>, vector<1x1xf32>
      tpu.vector_store %arg6[%c0_29, %c0_30], %52 {strides = array<i32>} : memref<1x1xf32, #tpu.memory_space<vmem>>, vector<1x1xf32>,
    } else {
    }
    %c0 = arith.constant 0 : index
    %c0_1 = arith.constant 0 : index
    %3 = vector.load %arg1[%c0, %c0_1] : memref<64x128xf32, #tpu.memory_space<vmem>>, vector<64x128xf32>
    %c0_2 = arith.constant 0 : index
    %c0_3 = arith.constant 0 : index
    %4 = vector.load %arg2[%c0_2, %c0_3] : memref<64x1xi32, #tpu.memory_space<vmem>>, vector<64x1xi32>
    %c0_4 = arith.constant 0 : index
    %c0_5 = arith.constant 0 : index
    %5 = vector.load %arg3[%c0_4, %c0_5] : memref<1x128xf32, #tpu.memory_space<vmem>>, vector<1x128xf32>
    %6 = tpu.iota {dimensions = array<i32: 1>} : vector<64x128xi32>
    %7 = vector.broadcast %4 : vector<64x1xi32> to vector<64x128xi32>
    %8 = arith.cmpi eq, %7, %6 : vector<64x128xi32>
    %cst = arith.constant dense<0xFF800000> : vector<64xf32>
    %9 = vector.multi_reduction <maximumf>, %3, %cst [1] : vector<64x128xf32> to vector<64xf32>
    %10 = vector.shape_cast %9 : vector<64xf32> to vector<64x1xf32>
    %11 = vector.broadcast %10 : vector<64x1xf32> to vector<64x128xf32>
    %12 = arith.subf %3, %11 : vector<64x128xf32>
    %13 = math.exp %12 : vector<64x128xf32>
    %cst_6 = arith.constant dense<0.000000e+00> : vector<64xf32>
    %14 = vector.multi_reduction <add>, %13, %cst_6 [1] : vector<64x128xf32> to vector<64xf32>
    %15 = vector.shape_cast %14 : vector<64xf32> to vector<64x1xf32>
    %16 = math.log %15 : vector<64x1xf32>
    %cst_7 = arith.constant 0.000000e+00 : f32
    %17 = vector.broadcast %cst_7 : f32 to vector<64x128xf32>
    %18 = arith.select %8, %12, %17 : vector<64x128xi1>, vector<64x128xf32>
    %cst_8 = arith.constant dense<0.000000e+00> : vector<64xf32>
    %19 = vector.multi_reduction <add>, %18, %cst_8 [1] : vector<64x128xf32> to vector<64xf32>
    %20 = vector.shape_cast %19 : vector<64xf32> to vector<64x1xf32>
    %21 = arith.subf %16, %20 : vector<64x1xf32>
    %cst_9 = arith.constant 0.000000e+00 : f32
    %22 = vector.shape_cast %5 : vector<1x128xf32> to vector<1x128xf32>
    %23 = vector.broadcast %22 : vector<1x128xf32> to vector<64x128xf32>
    %24 = vector.broadcast %cst_9 : f32 to vector<64x128xf32>
    %25 = arith.select %8, %23, %24 : vector<64x128xi1>, vector<64x128xf32>
    %cst_10 = arith.constant dense<0.000000e+00> : vector<64xf32>
    %26 = vector.multi_reduction <add>, %25, %cst_10 [1] : vector<64x128xf32> to vector<64xf32>
    %27 = vector.shape_cast %26 : vector<64xf32> to vector<64x1xf32>
    %c64_i32 = arith.constant 64 : i32
    %28 = arith.muli %arg0, %c64_i32 : i32
    %29 = tpu.iota {dimensions = array<i32: 0>} : vector<64x1xi32>
    %30 = vector.broadcast %28 : i32 to vector<64x1xi32>
    %31 = arith.addi %30, %29 : vector<64x1xi32>
    %c64_i32_11 = arith.constant 64 : i32
    %32 = vector.broadcast %c64_i32_11 : i32 to vector<64x1xi32>
    %33 = arith.cmpi slt, %31, %32 : vector<64x1xi32>
    %cst_12 = arith.constant 0.000000e+00 : f32
    %34 = vector.broadcast %cst_12 : f32 to vector<64x1xf32>
    %35 = arith.select %33, %27, %34 : vector<64x1xi1>, vector<64x1xf32>
    %c0_13 = arith.constant 0 : index
    %c0_14 = arith.constant 0 : index
    %36 = vector.load %arg5[%c0_13, %c0_14] : memref<1x1xf32, #tpu.memory_space<vmem>>, vector<1x1xf32>
    %37 = arith.mulf %35, %21 : vector<64x1xf32>
    %cst_15 = arith.constant dense<0.000000e+00> : vector<1xf32>
    %38 = vector.multi_reduction <add>, %37, %cst_15 [0] : vector<64x1xf32> to vector<1xf32>
    %39 = vector.shape_cast %38 : vector<1xf32> to vector<1x1xf32>
    %40 = arith.addf %36, %39 : vector<1x1xf32>
    %c0_16 = arith.constant 0 : index
    %c0_17 = arith.constant 0 : index
    %41 = vector.load %arg5[%c0_16, %c0_17] : memref<1x1xf32, #tpu.memory_space<vmem>>, vector<1x1xf32>
    tpu.vector_store %arg5[%c0_16, %c0_17], %40 {strides = array<i32>} : memref<1x1xf32, #tpu.memory_space<vmem>>, vector<1x1xf32>,
    %c0_18 = arith.constant 0 : index
    %c0_19 = arith.constant 0 : index
    %42 = vector.load %arg6[%c0_18, %c0_19] : memref<1x1xf32, #tpu.memory_space<vmem>>, vector<1x1xf32>
    %cst_20 = arith.constant dense<0.000000e+00> : vector<1xf32>
    %43 = vector.multi_reduction <add>, %35, %cst_20 [0] : vector<64x1xf32> to vector<1xf32>
    %44 = vector.shape_cast %43 : vector<1xf32> to vector<1x1xf32>
    %45 = arith.addf %42, %44 : vector<1x1xf32>
    %c0_21 = arith.constant 0 : index
    %c0_22 = arith.constant 0 : index
    %46 = vector.load %arg6[%c0_21, %c0_22] : memref<1x1xf32, #tpu.memory_space<vmem>>, vector<1x1xf32>
    tpu.vector_store %arg6[%c0_21, %c0_22], %45 {strides = array<i32>} : memref<1x1xf32, #tpu.memory_space<vmem>>, vector<1x1xf32>,
    %c0_i32_23 = arith.constant 0 : i32
    %47 = arith.cmpi eq, %arg0, %c0_i32_23 : i32
    %48 = arith.extui %47 : i1 to i32
    %c0_i32_24 = arith.constant 0 : i32
    %49 = arith.cmpi ne, %48, %c0_i32_24 : i32
    scf.if %49 {
      %c0_25 = arith.constant 0 : index
      %c0_26 = arith.constant 0 : index
      %50 = vector.load %arg5[%c0_25, %c0_26] : memref<1x1xf32, #tpu.memory_space<vmem>>, vector<1x1xf32>
      %c0_27 = arith.constant 0 : index
      %c0_28 = arith.constant 0 : index
      %51 = vector.load %arg6[%c0_27, %c0_28] : memref<1x1xf32, #tpu.memory_space<vmem>>, vector<1x1xf32>
      %52 = arith.divf %50, %51 : vector<1x1xf32>
      %c0_29 = arith.constant 0 : index
      %c0_30 = arith.constant 0 : index
      %53 = vector.load %arg4[%c0_29, %c0_30] : memref<1x1xf32, #tpu.memory_space<vmem>>, vector<1x1xf32>
      tpu.vector_store %arg4[%c0_29, %c0_30], %52 {strides = array<i32>} : memref<1x1xf32, #tpu.memory_space<vmem>>, vector<1x1xf32>,
    } else {
    }
    return
  }
  func.func @transform_0(%arg0: i32) -> (i32, i32) {
    %c0_i32 = arith.constant 0 : i32
    %c0_i32_0 = arith.constant 0 : i32
    return %arg0, %c0_i32 : i32, i32
  }
  func.func @transform_1(%arg0: i32) -> (i32, i32) {
    %c0_i32 = arith.constant 0 : i32
    %c0_i32_0 = arith.constant 0 : i32
    return %arg0, %c0_i32 : i32, i32
  }
  func.func @transform_2(%arg0: i32) -> (i32, i32) {
    %c0_i32 = arith.constant 0 : i32
    %c0_i32_0 = arith.constant 0 : i32
    %c0_i32_1 = arith.constant 0 : i32
    return %c0_i32, %c0_i32_0 : i32, i32
  }
  func.func @transform_3(%arg0: i32) -> (i32, i32) {
    %c0_i32 = arith.constant 0 : i32
    %c0_i32_0 = arith.constant 0 : i32
    %c0_i32_1 = arith.constant 0 : i32
    return %c0_i32, %c0_i32_0 : i32, i32
  }
}

</mosaic_0001>

<bundles_post_ra>
// kernel: tpu_custom_call.1
= control target key start
LH: loop header
LB: loop body
LE: loop exit
PB: predicated region body
PF: predicated region fallthrough
CT: control target
= control target key end

     0   :  { %v369_v4 = vmov 0   ;;  %s516_s0 = inlined_call_operand.vmem [shape: f32[64,128], index: 0, kind: input, shape index: {}]   ;;  %s517_s1 = inlined_call_operand.vmem [shape: s32[64,1], index: 1, kind: input, shape index: {}]   ;;  %s518_s2 = inlined_call_operand.vmem [shape: f32[1,128], index: 2, kind: input, shape index: {}]   ;;  %s519_s3 = inlined_call_operand.hbm [shape: f32[1,1], index: 3, kind: output, shape index: {}]  }
   0x1   :  { %v24_v0 = vld [vmem:[%s516_s0 + $0x10] sm:$0xff]  ;;  %v22_v1 = vld [vmem:[%s516_s0] sm:$0xff]  ;;  %v25_v2 = vld [vmem:[%s516_s0 + $0x18] sm:$0xff]  ;;  %310 = vset.pattern.permute.xlu1 %v369_v4  ;;  %309 = vset.pattern.permute.xlu0 %v369_v4 }
   0x2   :  { %77 = vmax.xlane.f32.xlu1 %v24_v0  ;;  %73 = vmax.xlane.f32.xlu0 %v22_v1  ;;  %v23_v3 = vld [vmem:[%s516_s0 + $0x8] sm:$0xff] }
   0x6   :  { %79 = vmax.xlane.f32.xlu1 %v25_v2  ;;  %75 = vmax.xlane.f32.xlu0 %v23_v3 }
   0x7   :  { %8 = vsyncpa [#allocation5], 0  ;;  %v27_v5 = vld [vmem:[%s516_s0 + $0x28] sm:$0xff]  ;;  %v26_v6 = vld [vmem:[%s516_s0 + $0x20] sm:$0xff]  ;;  %v39_v22 = vlaneseq  ;;  %vm19_vm8 = vcmask 0  }
   0x8   :  { %v413_v7 = vld [vmem:[%s516_s0 + $0x38] sm:$0xff]  ;;  %v418_v8 = vld [vmem:[%s516_s0 + $0x30] sm:$0xff]  ;;  %v31_v9 = vld [vmem:[%s517_s1 + $0x8] sm:$0xff] }
   0x9   :  { %v32_v10 = vld [vmem:[%s517_s1 + $0x10] sm:$0xff]  ;;  %v30_v11 = vld [vmem:[%s517_s1] sm:$0xff]  ;;  %v33_v12 = vld [vmem:[%s517_s1 + $0x18] sm:$0xff]  ;;  %v446_v26 = vand.u32 127, %v39_v22 }
   0xa   :  { %83 = vmax.xlane.f32.xlu1 %v27_v5  ;;  %81 = vmax.xlane.f32.xlu0 %v26_v6  ;;  %v34_v13 = vld [vmem:[%s517_s1 + $0x20] sm:$0xff]  ;;  %v35_v14 = vld [vmem:[%s517_s1 + $0x28] sm:$0xff]  ;;  %v36_v15 = vld [vmem:[%s517_s1 + $0x30] sm:$0xff] }
   0xb   :  { %v37_v16 = vld [vmem:[%s517_s1 + $0x38] sm:$0xff]  ;;  %v453_v28 = vld [vmem:[%s518_s2] ss:$0 sm:$0xff]  ;;  %s371_s1 = smov [#allocation4]  }
   0xc   :  { %s297_s2 = sshll.u32 %s371_s1, 4  ;;  %s298_s2 = int_to_ptr.vmem [resolvable:$true] %s297_s2 }
   0xd   :  { %s345_s18 = scalar_lea.vmem %s298_s2, 16  ;;  %s349_s19 = scalar_lea.vmem %s298_s2, 32 }
   0xe   :  { %87 = vmax.xlane.f32.xlu1 %v413_v7  ;;  %85 = vmax.xlane.f32.xlu0 %v418_v8  ;;  %p346_p0 = scmp.ne.s32.totalorder %s298_s2, %s345_s18  ;;  %p350_p1 = scmp.lt.s32.totalorder %s298_s2, %s298_s2 }
   0xf   :  { %p351_p2 = scmp.lt.s32.totalorder %s349_s19, %s345_s18 }
  0x11   :  { %p352_p3 = por %p351_p2, %p350_p1 }
  0x13   :  { %p353_p4 = pnand %p352_p3, %p346_p0 }
  0x1f   :  { %45 = vperm.xlu1 %310, %v31_v9  }
  0x23   :  { %48 = vperm.xlu1 %310, %v32_v10  }
  0x24   :  { %42 = vperm.xlu0 %309, %v30_v11  }
  0x27   :  { %51 = vperm.xlu1 %310, %v33_v12   ;;  %v370_v12 = vmov 0.0  }
  0x28   :  { %20 = vst.msk [vmem:[#allocation2] sm:$0x1] %vm19_vm8, %v370_v12  ;;  %21 = vst.msk [vmem:[#allocation3] sm:$0x1] %vm19_vm8, %v370_v12 }
  0x2b   :  { %54 = vperm.xlu1 %310, %v34_v13  }
  0x2f   :  { %57 = vperm.xlu1 %310, %v35_v14  }
  0x33   :  { %60 = vperm.xlu1 %310, %v36_v15  }
  0x37   :  { %63 = vperm.xlu1 %310, %v37_v16  }
  0x8f   :  { %v78_v17 = vpop.xlane.xlu1 %77  ;;  %v74_v18 = vpop.xlane.xlu0 %73 }
  0x90   :  { %v89_v24 = vsub.f32 %v22_v1, %v74_v18  ;;  %v91_v35 = vsub.f32 %v24_v0, %v78_v17 }
  0x92   :  { %v97_v29 = vmul.f32 1.442695, %v89_v24  ;;  %v101_v42 = vmul.f32 1.442695, %v91_v35 }
  0x93   :  { %v80_v19 = vpop.xlane.xlu1 %79  ;;  %v76_v20 = vpop.xlane.xlu0 %75 }
  0x94   :  { %v448_v27 = vsub.f32 %v25_v2, %v80_v19  ;;  %v90_v30 = vsub.f32 %v23_v3, %v76_v20  ;;  %311 = vpow2.f32 %v97_v29 }
  0x96   :  { %v103_v34 = vmul.f32 1.442695, %v448_v27  ;;  %v99_v36 = vmul.f32 1.442695, %v90_v30 }
  0x97   :  { %v84_v21 = vpop.xlane.xlu1 %83  ;;  %v82_v23 = vpop.xlane.xlu0 %81 }
  0x98   :  { %313 = vpow2.f32 %v103_v34  ;;  %v466_v41 = vsub.f32 %v27_v5, %v84_v21  ;;  %v93_v43 = vsub.f32 %v26_v6, %v82_v23 }
  0x99   :  { %315 = vpow2.f32 %v99_v36 }
  0x9a   :  { %v107_v47 = vmul.f32 1.442695, %v466_v41  ;;  %317 = vpow2.f32 %v101_v42  ;;  %v105_v48 = vmul.f32 1.442695, %v93_v43 }
  0x9b   :  { %v88_v25 = vpop.xlane.xlu1 %87  ;;  %v86_v31 = vpop.xlane.xlu0 %85 }
  0x9c   :  { %v95_v49 = vsub.f32 %v418_v8, %v86_v31  ;;  %319 = vpow2.f32 %v107_v47  ;;  %v96_v53 = vsub.f32 %v413_v7, %v88_v25 }
  0x9d   :  { %321 = vpow2.f32 %v105_v48 }
  0x9e   :  { %v312_v51 = vpop.eup %311  ;;  %v109_v54 = vmul.f32 1.442695, %v95_v49  ;;  %v111_v58 = vmul.f32 1.442695, %v96_v53 }
  0x9f   :  { %v46_v32 = vpop.permute.xlu1 %45 }
  0xa0   :  { %vm66_vm0 = vcmp.eq.s32.totalorder %v46_v32, %v446_v26  ;;  %323 = vpow2.f32 %v109_v54 }
  0xa1   :  { %v184_v33 = vsel %vm66_vm0, %v453_v28, 0.0  ;;  %325 = vpow2.f32 %v111_v58  ;;  %v146_v1 = vsel %vm66_vm0, %v90_v30, 0.0 }
  0xa2   :  { %193 = vadd.xlane.f32.xlu0 %v184_v33  ;;  %v314_v56 = vpop.eup %313 }
  0xa3   :  { %v49_v37 = vpop.permute.xlu1 %48  ;;  %v43_v38 = vpop.permute.xlu0 %42 }
  0xa4   :  { %vm67_vm1 = vcmp.eq.s32.totalorder %v49_v37, %v446_v26  ;;  %vm65_vm2 = vcmp.eq.s32.totalorder %v43_v38, %v446_v26  ;;  %v316_v57 = vpop.eup %315 }
  0xa5   :  { %v185_v39 = vsel %vm67_vm1, %v453_v28, 0.0  ;;  %v183_v40 = vsel %vm65_vm2, %v453_v28, 0.0  ;;  %v145_v46 = vsel %vm65_vm2, %v89_v24, 0.0  ;;  %v318_v59 = vpop.eup %317  ;;  %v147_v3 = vsel %vm67_vm1, %v91_v35, 0.0 }
  0xa6   :  { %195 = vadd.xlane.f32.xlu0 %v185_v39  ;;  %191 = vadd.xlane.f32.xlu1 %v183_v40  ;;  %v320_v61 = vpop.eup %319 }
  0xa7   :  { %v52_v44 = vpop.permute.xlu1 %51  ;;  %v322_v62 = vpop.eup %321 }
  0xa8   :  { %vm68_vm3 = vcmp.eq.s32.totalorder %v52_v44, %v446_v26 }
  0xa9   :  { %v186_v45 = vsel %vm68_vm3, %v453_v28, 0.0  ;;  %v148_v5 = vsel %vm68_vm3, %v448_v27, 0.0 }
  0xaa   :  { %197 = vadd.xlane.f32.xlu0 %v186_v45  ;;  %153 = vadd.xlane.f32.xlu1 %v145_v46  ;;  %v324_v63 = vpop.eup %323 }
  0xab   :  { %v55_v50 = vpop.permute.xlu1 %54  ;;  %v326_v2 = vpop.eup %325 }
  0xac   :  { %vm69_vm4 = vcmp.eq.s32.totalorder %v55_v50, %v446_v26 }
  0xad   :  { %v187_v52 = vsel %vm69_vm4, %v453_v28, 0.0  ;;  %v149_v7 = vsel %vm69_vm4, %v93_v43, 0.0 }
  0xae   :  { %199 = vadd.xlane.f32.xlu0 %v187_v52  ;;  %113 = vadd.xlane.f32.xlu1 %v312_v51 }
  0xaf   :  { %v58_v55 = vpop.permute.xlu1 %57 }
  0xb0   :  { %vm70_vm5 = vcmp.eq.s32.totalorder %v58_v55, %v446_v26 }
  0xb1   :  { %v188_v60 = vsel %vm70_vm5, %v453_v28, 0.0  ;;  %v150_v10 = vsel %vm70_vm5, %v466_v41, 0.0 }
  0xb2   :  { %115 = vadd.xlane.f32.xlu0 %v316_v57  ;;  %119 = vadd.xlane.f32.xlu1 %v314_v56 }
  0xb3   :  { %v61_v0 = vpop.permute.xlu1 %60 }
  0xb4   :  { %vm71_vm6 = vcmp.eq.s32.totalorder %v61_v0, %v446_v26 }
  0xb5   :  { %v189_v6 = vsel %vm71_vm6, %v453_v28, 0.0  ;;  %v151_v9 = vsel %vm71_vm6, %v95_v49, 0.0 }
  0xb6   :  { %117 = vadd.xlane.f32.xlu0 %v318_v59  ;;  %201 = vadd.xlane.f32.xlu1 %v188_v60 }
  0xb7   :  { %v64_v4 = vpop.permute.xlu1 %63 }
  0xb8   :  { %vm72_vm7 = vcmp.eq.s32.totalorder %v64_v4, %v446_v26 }
  0xb9   :  { %v190_v8 = vsel %vm72_vm7, %v453_v28, 0.0  ;;  %v152_v11 = vsel %vm72_vm7, %v96_v53, 0.0 }
  0xba   :  { %121 = vadd.xlane.f32.xlu0 %v322_v62  ;;  %123 = vadd.xlane.f32.xlu1 %v320_v61 }
  0xbe   :  { %155 = vadd.xlane.f32.xlu0 %v146_v1  ;;  %125 = vadd.xlane.f32.xlu1 %v324_v63 }
  0xc2   :  { %157 = vadd.xlane.f32.xlu0 %v147_v3  ;;  %127 = vadd.xlane.f32.xlu1 %v326_v2 }
  0xc6   :  { %159 = vadd.xlane.f32.xlu0 %v148_v5  ;;  %203 = vadd.xlane.f32.xlu1 %v189_v6 }
  0xca   :  { %161 = vadd.xlane.f32.xlu0 %v149_v7  ;;  %205 = vadd.xlane.f32.xlu1 %v190_v8 }
  0xce   :  { %165 = vadd.xlane.f32.xlu0 %v151_v9  ;;  %163 = vadd.xlane.f32.xlu1 %v150_v10 }
  0xd2   :  { %167 = vadd.xlane.f32.xlu1 %v152_v11 }
 0x12f   :  { %v194_v13 = vpop.xlane.xlu0 %193 }
 0x133   :  { %v192_v14 = vpop.xlane.xlu1 %191  ;;  %v196_v15 = vpop.xlane.xlu0 %195 }
 0x134   :  { %v268_v26 = vadd.f32 %v194_v13, %v192_v14 }
 0x136   :  { %v269_v31 = vadd.f32 %v268_v26, %v196_v15 }
 0x137   :  { %v154_v16 = vpop.xlane.xlu1 %153  ;;  %v198_v17 = vpop.xlane.xlu0 %197 }
 0x138   :  { %v270_v40 = vadd.f32 %v269_v31, %v198_v17 }
 0x13b   :  { %v114_v18 = vpop.xlane.xlu1 %113  ;;  %v200_v19 = vpop.xlane.xlu0 %199 }
 0x13c   :  { %327 = vlog2.f32 %v114_v18  ;;  %v271_v43 = vadd.f32 %v270_v40, %v200_v19 }
 0x13f   :  { %v120_v20 = vpop.xlane.xlu1 %119  ;;  %v116_v21 = vpop.xlane.xlu0 %115 }
 0x140   :  { %329 = vlog2.f32 %v116_v21 }
 0x143   :  { %v202_v22 = vpop.xlane.xlu1 %201  ;;  %v118_v23 = vpop.xlane.xlu0 %117 }
 0x144   :  { %331 = vlog2.f32 %v118_v23  ;;  %v272_v49 = vadd.f32 %v271_v43, %v202_v22 }
 0x145   :  { %333 = vlog2.f32 %v120_v20 }
 0x146   :  { %v328_v27 = vpop.eup %327 }
 0x147   :  { %v124_v24 = vpop.xlane.xlu1 %123  ;;  %v122_v25 = vpop.xlane.xlu0 %121  ;;  %v130_v32 = vmul.f32 0.6931472, %v328_v27 }
 0x148   :  { %335 = vlog2.f32 %v122_v25 }
 0x149   :  { %337 = vlog2.f32 %v124_v24  ;;  %v169_v41 = vsub.f32 %v130_v32, %v154_v16  ;;  %v267_v24 = vld [vmem:[#allocation3] sm:$0x1]  ;;  %v242_v32 = vld [vmem:[#allocation2] sm:$0x1] }
 0x14a   :  { %v330_v28 = vpop.eup %329 }
 0x14b   :  { %v126_v29 = vpop.xlane.xlu1 %125  ;;  %v156_v30 = vpop.xlane.xlu0 %155  ;;  %v132_v33 = vmul.f32 0.6931472, %v330_v28  ;;  %v243_v50 = vmul.f32 %v192_v14, %v169_v41 }
 0x14c   :  { %339 = vlog2.f32 %v126_v29 }
 0x14d   :  { %v170_v35 = vsub.f32 %v132_v33, %v156_v30 }
 0x14e   :  { %v332_v34 = vpop.eup %331 }
 0x14f   :  { %v334_v36 = vpop.eup %333  ;;  %v128_v37 = vpop.xlane.xlu1 %127  ;;  %v134_v38 = vmul.f32 0.6931472, %v332_v34  ;;  %v244_v44 = vmul.f32 %v194_v13, %v170_v35 }
 0x150   :  { %v158_v39 = vpop.xlane.xlu0 %157  ;;  %341 = vlog2.f32 %v128_v37  ;;  %v136_v45 = vmul.f32 0.6931472, %v334_v36 }
 0x151   :  { %v171_v42 = vsub.f32 %v134_v38, %v158_v39  ;;  %v251_v54 = vadd.f32 %v244_v44, %v243_v50 }
 0x152   :  { %v336_v46 = vpop.eup %335 }
 0x153   :  { %v204_v47 = vpop.xlane.xlu1 %203  ;;  %v245_v51 = vmul.f32 %v196_v15, %v171_v42  ;;  %v338_v53 = vpop.eup %337  ;;  %v138_v56 = vmul.f32 0.6931472, %v336_v46 }
 0x154   :  { %v160_v48 = vpop.xlane.xlu0 %159  ;;  %v273_v55 = vadd.f32 %v272_v49, %v204_v47  ;;  %v140_v2 = vmul.f32 0.6931472, %v338_v53 }
 0x155   :  { %v172_v52 = vsub.f32 %v136_v45, %v160_v48  ;;  %v252_v60 = vadd.f32 %v251_v54, %v245_v51 }
 0x156   :  { %v340_v57 = vpop.eup %339 }
 0x157   :  { %v206_v58 = vpop.xlane.xlu1 %205  ;;  %v246_v61 = vmul.f32 %v198_v17, %v172_v52  ;;  %v142_v3 = vmul.f32 0.6931472, %v340_v57 }
 0x158   :  { %v162_v59 = vpop.xlane.xlu0 %161  ;;  %v274_v62 = vadd.f32 %v273_v55, %v206_v58 }
 0x159   :  { %v173_v63 = vsub.f32 %v138_v56, %v162_v59  ;;  %v253_v7 = vadd.f32 %v252_v60, %v246_v61 }
 0x15a   :  { %v275_v0 = vrot.slane %v274_v62, 4  ;;  %v342_v4 = vpop.eup %341 }
 0x15b   :  { %v247_v1 = vmul.f32 %v200_v19, %v173_v63  ;;  %v164_v5 = vpop.xlane.xlu1 %163  ;;  %v144_v14 = vmul.f32 0.6931472, %v342_v4 }
 0x15c   :  { %v166_v6 = vpop.xlane.xlu0 %165  ;;  %v276_v8 = vadd.f32 %v275_v0, %v274_v62  ;;  %v174_v9 = vsub.f32 %v140_v2, %v164_v5 }
 0x15d   :  { %v175_v10 = vsub.f32 %v142_v3, %v166_v6  ;;  %v254_v12 = vadd.f32 %v253_v7, %v247_v1 }
 0x15e   :  { %v277_v11 = vrot.slane %v276_v8, 2  ;;  %v248_v13 = vmul.f32 %v202_v22, %v174_v9 }
 0x15f   :  { %v168_v15 = vpop.xlane.xlu1 %167  ;;  %v249_v18 = vmul.f32 %v204_v47, %v175_v10 }
 0x160   :  { %v278_v16 = vadd.f32 %v277_v11, %v276_v8  ;;  %v255_v17 = vadd.f32 %v254_v12, %v248_v13  ;;  %v176_v20 = vsub.f32 %v144_v14, %v168_v15 }
 0x162   :  { %v279_v21 = vrot.slane %v278_v16, 1  ;;  %v256_v19 = vadd.f32 %v255_v17, %v249_v18  ;;  %v250_v23 = vmul.f32 %v206_v58, %v176_v20 }
 0x164   :  { %v280_v25 = vadd.f32 %v279_v21, %v278_v16  ;;  %v257_v26 = vadd.f32 %v256_v19, %v250_v23 }
 0x166   :  { %v258_v27 = vrot.slane %v257_v26, 4  ;;  %v281_v28 = vadd.f32 %v280_v25, %v267_v24 }
 0x168   :  { %v259_v29 = vadd.f32 %v258_v27, %v257_v26  ;;  %282 = vst.msk [vmem:[#allocation3] sm:$0x1] %vm19_vm8, %v281_v28 }
 0x16a   :  { %v260_v30 = vrot.slane %v259_v29, 2 }
 0x16c   :  { %v261_v31 = vadd.f32 %v260_v30, %v259_v29 }
 0x16e   :  { %v262_v22 = vrot.slane %v261_v31, 1 }
 0x16f   :  { %v287_v33 = vld [vmem:[#allocation3] sm:$0x1] }
 0x170   :  { %v263_v34 = vadd.f32 %v262_v22, %v261_v31  ;;  %343 = vrcp.f32 %v287_v33 }
 0x172   :  { %v264_v35 = vadd.f32 %v263_v34, %v242_v32 }
 0x174   :  { %266 = vst.msk [vmem:[#allocation2] sm:$0x1] %vm19_vm8, %v264_v35 }
 0x17a   :  { %v344_v36 = vpop.eup %343 }
 0x17b   :  { %v286_v37 = vld [vmem:[#allocation2] sm:$0x1] }
 0x17c   :  { %v289_v38 = vmul.f32 %v344_v36, %v286_v37 }
 0x17e   :  { %290 = vst.msk [vmem:[#allocation4] sm:$0x1] %vm19_vm8, %v289_v38 }
 0x17f   :  { %356 = shalt.err (!%p353_p4)
}
 0x180   :  { %s357_s22 = scalar_lea.hbm %s519_s3, 16 }
 0x181   :  { %p358_p5 = scmp.ne.s32.totalorder %s519_s3, %s357_s22  ;;  %p361_p6 = scmp.lt.u32.totalorder %s357_s22, %s519_s3 }
 0x183   :  { %p363_p7 = pnand %p361_p6, %p358_p5 }
 0x185   :  { %366 = shalt.err (!%p363_p7)
}
 0x186   :  { %300 = dma.vmem_to_hbm [thread:$0]  %s298_s2, 16, %s519_s3, [#allocation5]  }
 0x187   :  { %367 = dma.done.wait [#allocation5], 16  }
 0x188   :  { %368 = vsyncadd [#allocation5], 4294967280 }
 0x189   :  { %304 = vsyncpa [#allocation5], 1 }

</bundles_post_ra>
